<compile_context>
chip_gen: v7x
topology: tpu7x:2x2x1
jax: 0.10.0
libtpu: 0.0.40
codegen_flags: <defaults>
</compile_context>

<pallas_src>
import functools

import jax
import jax.numpy as jnp
from jax.experimental import pallas as pl
from jax.experimental.pallas import tpu as pltpu

# ---- model hyperparameters (small, consistent with the module) ----
B = 2        # batch
T = 8        # sequence length
N_EMB = 32   # embedding dim (C)
N_HEAD = 4
HEAD_SIZE = N_EMB // N_HEAD
EPS = 1e-5   # torch LayerNorm default


def block_kernel(x_ref,
                 g1_ref, be1_ref,                 # LN1 gamma/beta   (1, C)
                 wqkv_ref,                        # fused QKV        (C, 3C)  bf16
                 wo_h_ref, bo_ref,                # attn out proj    (H, hs, C) bf16, (1, C)
                 g2_ref, be2_ref,                 # LN2 gamma/beta   (1, C)
                 w1_ref, b1_ref,                  # FF linear        (C, 4C) bf16, (1, 4C)
                 w2_ref, b2_ref,                  # FF proj          (4C, C) bf16, (1, C)
                 o_ref,
                 *, batch, seq_len, n_head, head_size):
    x = x_ref[...].astype(jnp.float32)            # (N, C), N = B*T (rows folded)
    N, C = x.shape

    # ---------------- LayerNorm 1 (f32 stats, VPU) ----------------
    mu = jnp.mean(x, axis=-1, keepdims=True)
    var = jnp.mean((x - mu) ** 2, axis=-1, keepdims=True)
    xn1 = (x - mu) * jax.lax.rsqrt(var + EPS) * g1_ref[0] + be1_ref[0]

    # ---------------- fused QKV projection (bf16 MXU, f32 acc) ----------------
    # Row folding kept here: M = B*T rows per matmul keeps the MXU better fed.
    qkv = jnp.dot(xn1.astype(jnp.bfloat16), wqkv_ref[...],
                  preferred_element_type=jnp.float32)          # (N, 3C) f32

    # NOTE: reference scales by full embedding dim C (not head_size) -- reproduce it.
    # Scale folded into q (N*hs mults) instead of the (G,T,T) score tensor.
    scale = 1.0 / (C ** 0.5)
    q_f = qkv[:, :C] * scale
    k_f = qkv[:, C:2 * C]
    v_f = qkv[:, 2 * C:]

    # Batch un-folded for attention: per-(batch, head) tiles (G, T, hs), G = B*H,
    # ordered g = b*n_head + h.  Static sublane-tile row slices + lane slices.
    def bh_slices(t):
        return jnp.stack(
            [t[b * seq_len:(b + 1) * seq_len, h * head_size:(h + 1) * head_size]
             for b in range(batch) for h in range(n_head)], axis=0)

    q_g = bh_slices(q_f).astype(jnp.bfloat16)      # (G, T, hs)
    k_g = bh_slices(k_f).astype(jnp.bfloat16)
    v_g = bh_slices(v_f).astype(jnp.bfloat16)

    # plain causal additive mask (T, T) — no cross-batch term needed anymore
    r = jax.lax.broadcasted_iota(jnp.int32, (seq_len, seq_len), 0)
    c = jax.lax.broadcasted_iota(jnp.int32, (seq_len, seq_len), 1)
    mask_add = jnp.where(c <= r, 0.0, -1e30)       # (T, T) f32

    # batched attention over (batch, head) groups — scores are (B,H,T,T), not (H,BT,BT)
    s = jnp.einsum('gnd,gmd->gnm', q_g, k_g,
                   preferred_element_type=jnp.float32) + mask_add   # (G, T, T)
    m = jnp.max(s, axis=-1, keepdims=True)
    e = jnp.exp(s - m)
    denom = jnp.sum(e, axis=-1, keepdims=True)
    pv = jnp.einsum('gnm,gmd->gnd', e.astype(jnp.bfloat16), v_g,
                    preferred_element_type=jnp.float32)             # (G, T, hs)
    att_g = pv * pl.reciprocal(denom, approx=True)  # normalization deferred, EUP recip

    # output projection with head merge folded in: per batch, sum_h att[b,h] @ Wo[h]
    rows = []
    for b in range(batch):                          # small static B; unrolled
        blk = att_g[b * n_head:(b + 1) * n_head].astype(jnp.bfloat16)   # (H, T, hs)
        p = jnp.einsum('hnd,hdc->hnc', blk, wo_h_ref[...],
                       preferred_element_type=jnp.float32)              # (H, T, C)
        rows.append(jnp.sum(p, axis=0))                                 # (T, C)
    att = jnp.concatenate(rows, axis=0) + bo_ref[0]                     # (N, C)
    # dropout = identity (eval mode)

    x1 = x + att                                   # residual 1

    # ---------------- LayerNorm 2 ----------------
    mu2 = jnp.mean(x1, axis=-1, keepdims=True)
    var2 = jnp.mean((x1 - mu2) ** 2, axis=-1, keepdims=True)
    xn2 = (x1 - mu2) * jax.lax.rsqrt(var2 + EPS) * g2_ref[0] + be2_ref[0]

    # ---------------- FeedForward (bf16 MXU, f32 acc) ----------------
    h1 = jnp.maximum(
        jnp.dot(xn2.astype(jnp.bfloat16), w1_ref[...],
                preferred_element_type=jnp.float32) + b1_ref[0], 0.0)
    ff = jnp.dot(h1.astype(jnp.bfloat16), w2_ref[...],
                 preferred_element_type=jnp.float32) + b2_ref[0]
    # dropout = identity (eval mode)

    o_ref[...] = (x1 + ff).astype(o_ref.dtype)


def transformer_block(x, params):
    """x: (B, T, C) float32.  params: dict of f32 weights in (in, out) layout."""
    Bn, Tn, C = x.shape
    N = Bn * Tn
    NH = N_HEAD
    HS = C // NH

    # fold batch into rows for the row-wise matmuls; attention un-folds per batch
    # inside the kernel (no mask-dependent cross-batch interaction anywhere).
    x2 = x.reshape(N, C)

    # weight prep (pure JAX, outside the kernel): fuse QKV, split Wo per head,
    # cast matmul weights to bf16 (halves weight DMA). LN params / biases stay f32.
    wqkv = jnp.concatenate([params["wq"], params["wk"], params["wv"]],
                           axis=1).astype(jnp.bfloat16)           # (C, 3C)
    wo_h = params["wo"].reshape(NH, HS, C).astype(jnp.bfloat16)   # (H, hs, C)
    w1 = params["w1"].astype(jnp.bfloat16)                        # (C, 4C)
    w2 = params["w2"].astype(jnp.bfloat16)                        # (4C, C)

    kernel = functools.partial(block_kernel, batch=Bn, seq_len=Tn,
                               n_head=NH, head_size=HS)

    # Grid-less call: single kernel invocation, all operands resident in VMEM,
    # no software pipeline => no double-buffered copies of operands that are only
    # read once (review item for the grid=(1,) case).
    out2 = pl.pallas_call(
        kernel,
        out_shape=jax.ShapeDtypeStruct((N, C), x.dtype),
        compiler_params=pltpu.CompilerParams(
            vmem_limit_bytes=16 * 1024 * 1024),
    )(x2,
      params["g1"], params["be1"],
      wqkv,
      wo_h, params["bo"],
      params["g2"], params["be2"],
      w1, params["b1"],
      w2, params["b2"])

    return out2.reshape(Bn, Tn, C)


def make_params(key, C, n_head):
    H = 4 * C
    ks = jax.random.split(key, 10)
    s = 0.02
    return {
        "g1": jnp.ones((1, C), jnp.float32),
        "be1": jnp.zeros((1, C), jnp.float32),
        # per-head K/Q/V weights concatenated along the output axis, matching
        # torch.cat([head(x) for head in heads], dim=-1)
        "wq": s * jax.random.normal(ks[0], (C, C), jnp.float32),
        "wk": s * jax.random.normal(ks[1], (C, C), jnp.float32),
        "wv": s * jax.random.normal(ks[2], (C, C), jnp.float32),
        "wo": s * jax.random.normal(ks[3], (C, C), jnp.float32),
        "bo": s * jax.random.normal(ks[4], (1, C), jnp.float32),
        "g2": jnp.ones((1, C), jnp.float32),
        "be2": jnp.zeros((1, C), jnp.float32),
        "w1": s * jax.random.normal(ks[5], (C, H), jnp.float32),
        "b1": s * jax.random.normal(ks[6], (1, H), jnp.float32),
        "w2": s * jax.random.normal(ks[7], (H, C), jnp.float32),
        "b2": s * jax.random.normal(ks[8], (1, C), jnp.float32),
    }


def reference_block(x, p):
    """Pure-JAX f32 reference replicating the PyTorch forward (dropout in eval mode)."""
    C = x.shape[-1]

    def ln(z, g, b):
        mu = jnp.mean(z, axis=-1, keepdims=True)
        var = jnp.mean((z - mu) ** 2, axis=-1, keepdims=True)
        return (z - mu) / jnp.sqrt(var + EPS) * g[0] + b[0]

    xn1 = ln(x, p["g1"], p["be1"])
    q = xn1 @ p["wq"]; k = xn1 @ p["wk"]; v = xn1 @ p["wv"]
    Tn = x.shape[1]
    mask = jnp.tril(jnp.ones((Tn, Tn), bool))
    outs = []
    for h in range(N_HEAD):
        sl = slice(h * HEAD_SIZE, (h + 1) * HEAD_SIZE)
        wei = q[..., sl] @ jnp.swapaxes(k[..., sl], -1, -2) / (C ** 0.5)
        wei = jnp.where(mask, wei, -jnp.inf)
        wei = jax.nn.softmax(wei, axis=-1)
        outs.append(wei @ v[..., sl])
    att = jnp.concatenate(outs, axis=-1) @ p["wo"] + p["bo"][0]
    x1 = x + att
    xn2 = ln(x1, p["g2"], p["be2"])
    ff = jnp.maximum(xn2 @ p["w1"] + p["b1"][0], 0.0) @ p["w2"] + p["b2"][0]
    return x1 + ff


if __name__ == "__main__":
    key = jax.random.PRNGKey(0)
    kx, kp = jax.random.split(key)
    x = jax.random.normal(kx, (B, T, N_EMB), jnp.float32)
    params = make_params(kp, N_EMB, N_HEAD)

    out = transformer_block(x, params)
    out = jax.block_until_ready(out)

    ref = reference_block(x, params)
    assert out.shape == (B, T, N_EMB)
    # bf16 MXU matmuls + approximate EUP reciprocal vs a pure-f32 reference:
    # a few-1e-3 absolute tolerance is appropriate.
    assert jnp.allclose(out, ref, atol=5e-3, rtol=5e-3), "mismatch vs reference"

    print("KERNEL_OK")
</pallas_src>

<mosaic_0001>
module attributes {stable_mosaic.version = 11 : i64} {
  func.func @block_kernel(%arg0: memref<16x32xf32, #tpu.memory_space<vmem>>, %arg1: memref<1x32xf32, #tpu.memory_space<vmem>>, %arg2: memref<1x32xf32, #tpu.memory_space<vmem>>, %arg3: memref<32x96xbf16, #tpu.memory_space<vmem>>, %arg4: memref<4x8x32xbf16, #tpu.memory_space<vmem>>, %arg5: memref<1x32xf32, #tpu.memory_space<vmem>>, %arg6: memref<1x32xf32, #tpu.memory_space<vmem>>, %arg7: memref<1x32xf32, #tpu.memory_space<vmem>>, %arg8: memref<32x128xbf16, #tpu.memory_space<vmem>>, %arg9: memref<1x128xf32, #tpu.memory_space<vmem>>, %arg10: memref<128x32xbf16, #tpu.memory_space<vmem>>, %arg11: memref<1x32xf32, #tpu.memory_space<vmem>>, %arg12: memref<16x32xf32, #tpu.memory_space<vmem>>) attributes {dimension_semantics = [], scalar_prefetch = 0 : i64, scratch_operands = 0 : i64, tpu.core_type = #tpu.core_type<tc>} {
    %c0 = arith.constant 0 : index
    %c0_0 = arith.constant 0 : index
    %0 = vector.load %arg0[%c0, %c0_0] : memref<16x32xf32, #tpu.memory_space<vmem>>, vector<16x32xf32>
    %cst = arith.constant dense<0.000000e+00> : vector<16xf32>
    %1 = vector.multi_reduction <add>, %0, %cst [1] : vector<16x32xf32> to vector<16xf32>
    %2 = vector.shape_cast %1 : vector<16xf32> to vector<16x1xf32>
    %cst_1 = arith.constant 3.200000e+01 : f32
    %3 = vector.broadcast %cst_1 : f32 to vector<16x1xf32>
    %4 = arith.divf %2, %3 : vector<16x1xf32>
    %5 = vector.broadcast %4 : vector<16x1xf32> to vector<16x32xf32>
    %6 = arith.subf %0, %5 : vector<16x32xf32>
    %7 = arith.mulf %6, %6 : vector<16x32xf32>
    %cst_2 = arith.constant dense<0.000000e+00> : vector<16xf32>
    %8 = vector.multi_reduction <add>, %7, %cst_2 [1] : vector<16x32xf32> to vector<16xf32>
    %9 = vector.shape_cast %8 : vector<16xf32> to vector<16x1xf32>
    %cst_3 = arith.constant 3.200000e+01 : f32
    %10 = vector.broadcast %cst_3 : f32 to vector<16x1xf32>
    %11 = arith.divf %9, %10 : vector<16x1xf32>
    %12 = vector.broadcast %4 : vector<16x1xf32> to vector<16x32xf32>
    %13 = arith.subf %0, %12 : vector<16x32xf32>
    %cst_4 = arith.constant 9.99999974E-6 : f32
    %14 = vector.broadcast %cst_4 : f32 to vector<16x1xf32>
    %15 = arith.addf %11, %14 : vector<16x1xf32>
    %16 = math.rsqrt %15 : vector<16x1xf32>
    %17 = vector.broadcast %16 : vector<16x1xf32> to vector<16x32xf32>
    %18 = arith.mulf %13, %17 : vector<16x32xf32>
    %c0_5 = arith.constant 0 : index
    %c0_6 = arith.constant 0 : index
    %19 = vector.load %arg1[%c0_5, %c0_6] : memref<1x32xf32, #tpu.memory_space<vmem>>, vector<1x32xf32>
    %20 = vector.shape_cast %19 : vector<1x32xf32> to vector<32xf32>
    %21 = vector.shape_cast %20 : vector<32xf32> to vector<1x32xf32>
    %22 = vector.broadcast %21 : vector<1x32xf32> to vector<16x32xf32>
    %23 = arith.mulf %18, %22 : vector<16x32xf32>
    %c0_7 = arith.constant 0 : index
    %c0_8 = arith.constant 0 : index
    %24 = vector.load %arg2[%c0_7, %c0_8] : memref<1x32xf32, #tpu.memory_space<vmem>>, vector<1x32xf32>
    %25 = vector.shape_cast %24 : vector<1x32xf32> to vector<32xf32>
    %26 = vector.shape_cast %25 : vector<32xf32> to vector<1x32xf32>
    %27 = vector.broadcast %26 : vector<1x32xf32> to vector<16x32xf32>
    %28 = arith.addf %23, %27 : vector<16x32xf32>
    %29 = arith.truncf %28 : vector<16x32xf32> to vector<16x32xbf16>
    %c0_9 = arith.constant 0 : index
    %c0_10 = arith.constant 0 : index
    %30 = vector.load %arg3[%c0_9, %c0_10] : memref<32x96xbf16, #tpu.memory_space<vmem>>, vector<32x96xbf16>
    %cst_11 = arith.constant dense<0.000000e+00> : vector<16x96xf32>
    %31 = tpu.matmul %29, %30, %cst_11 {dimension_numbers = #tpu.dot_dimension_numbers<[1], [0], [0], [1], [0, 0, 1, 1], [], []>} : vector<16x32xbf16>, vector<32x96xbf16>, vector<16x96xf32> -> vector<16x96xf32>
    %32 = vector.extract_strided_slice %31 {offsets = [0, 0], sizes = [16, 32], strides = [1, 1]} : vector<16x96xf32> to vector<16x32xf32>
    %cst_12 = arith.constant 0.176776692 : f32
    %33 = vector.broadcast %cst_12 : f32 to vector<16x32xf32>
    %34 = arith.mulf %32, %33 : vector<16x32xf32>
    %35 = vector.extract_strided_slice %31 {offsets = [0, 32], sizes = [16, 32], strides = [1, 1]} : vector<16x96xf32> to vector<16x32xf32>
    %36 = vector.extract_strided_slice %31 {offsets = [0, 64], sizes = [16, 32], strides = [1, 1]} : vector<16x96xf32> to vector<16x32xf32>
    %37 = vector.extract_strided_slice %34 {offsets = [0, 0], sizes = [8, 8], strides = [1, 1]} : vector<16x32xf32> to vector<8x8xf32>
    %38 = vector.extract_strided_slice %34 {offsets = [0, 8], sizes = [8, 8], strides = [1, 1]} : vector<16x32xf32> to vector<8x8xf32>
    %39 = vector.extract_strided_slice %34 {offsets = [0, 16], sizes = [8, 8], strides = [1, 1]} : vector<16x32xf32> to vector<8x8xf32>
    %40 = vector.extract_strided_slice %34 {offsets = [0, 24], sizes = [8, 8], strides = [1, 1]} : vector<16x32xf32> to vector<8x8xf32>
    %41 = vector.extract_strided_slice %34 {offsets = [8, 0], sizes = [8, 8], strides = [1, 1]} : vector<16x32xf32> to vector<8x8xf32>
    %42 = vector.extract_strided_slice %34 {offsets = [8, 8], sizes = [8, 8], strides = [1, 1]} : vector<16x32xf32> to vector<8x8xf32>
    %43 = vector.extract_strided_slice %34 {offsets = [8, 16], sizes = [8, 8], strides = [1, 1]} : vector<16x32xf32> to vector<8x8xf32>
    %44 = vector.extract_strided_slice %34 {offsets = [8, 24], sizes = [8, 8], strides = [1, 1]} : vector<16x32xf32> to vector<8x8xf32>
    %45 = vector.shape_cast %37 : vector<8x8xf32> to vector<1x8x8xf32>
    %46 = vector.shape_cast %38 : vector<8x8xf32> to vector<1x8x8xf32>
    %47 = vector.shape_cast %39 : vector<8x8xf32> to vector<1x8x8xf32>
    %48 = vector.shape_cast %40 : vector<8x8xf32> to vector<1x8x8xf32>
    %49 = vector.shape_cast %41 : vector<8x8xf32> to vector<1x8x8xf32>
    %50 = vector.shape_cast %42 : vector<8x8xf32> to vector<1x8x8xf32>
    %51 = vector.shape_cast %43 : vector<8x8xf32> to vector<1x8x8xf32>
    %52 = vector.shape_cast %44 : vector<8x8xf32> to vector<1x8x8xf32>
    %53 = tpu.concatenate %45, %46, %47, %48, %49, %50, %51, %52 in 0 : vector<1x8x8xf32>, vector<1x8x8xf32>, vector<1x8x8xf32>, vector<1x8x8xf32>, vector<1x8x8xf32>, vector<1x8x8xf32>, vector<1x8x8xf32>, vector<1x8x8xf32> -> vector<8x8x8xf32>
    %54 = arith.truncf %53 : vector<8x8x8xf32> to vector<8x8x8xbf16>
    %55 = vector.extract_strided_slice %35 {offsets = [0, 0], sizes = [8, 8], strides = [1, 1]} : vector<16x32xf32> to vector<8x8xf32>
    %56 = vector.extract_strided_slice %35 {offsets = [0, 8], sizes = [8, 8], strides = [1, 1]} : vector<16x32xf32> to vector<8x8xf32>
    %57 = vector.extract_strided_slice %35 {offsets = [0, 16], sizes = [8, 8], strides = [1, 1]} : vector<16x32xf32> to vector<8x8xf32>
    %58 = vector.extract_strided_slice %35 {offsets = [0, 24], sizes = [8, 8], strides = [1, 1]} : vector<16x32xf32> to vector<8x8xf32>
    %59 = vector.extract_strided_slice %35 {offsets = [8, 0], sizes = [8, 8], strides = [1, 1]} : vector<16x32xf32> to vector<8x8xf32>
    %60 = vector.extract_strided_slice %35 {offsets = [8, 8], sizes = [8, 8], strides = [1, 1]} : vector<16x32xf32> to vector<8x8xf32>
    %61 = vector.extract_strided_slice %35 {offsets = [8, 16], sizes = [8, 8], strides = [1, 1]} : vector<16x32xf32> to vector<8x8xf32>
    %62 = vector.extract_strided_slice %35 {offsets = [8, 24], sizes = [8, 8], strides = [1, 1]} : vector<16x32xf32> to vector<8x8xf32>
    %63 = vector.shape_cast %55 : vector<8x8xf32> to vector<1x8x8xf32>
    %64 = vector.shape_cast %56 : vector<8x8xf32> to vector<1x8x8xf32>
    %65 = vector.shape_cast %57 : vector<8x8xf32> to vector<1x8x8xf32>
    %66 = vector.shape_cast %58 : vector<8x8xf32> to vector<1x8x8xf32>
    %67 = vector.shape_cast %59 : vector<8x8xf32> to vector<1x8x8xf32>
    %68 = vector.shape_cast %60 : vector<8x8xf32> to vector<1x8x8xf32>
    %69 = vector.shape_cast %61 : vector<8x8xf32> to vector<1x8x8xf32>
    %70 = vector.shape_cast %62 : vector<8x8xf32> to vector<1x8x8xf32>
    %71 = tpu.concatenate %63, %64, %65, %66, %67, %68, %69, %70 in 0 : vector<1x8x8xf32>, vector<1x8x8xf32>, vector<1x8x8xf32>, vector<1x8x8xf32>, vector<1x8x8xf32>, vector<1x8x8xf32>, vector<1x8x8xf32>, vector<1x8x8xf32> -> vector<8x8x8xf32>
    %72 = arith.truncf %71 : vector<8x8x8xf32> to vector<8x8x8xbf16>
    %73 = vector.extract_strided_slice %36 {offsets = [0, 0], sizes = [8, 8], strides = [1, 1]} : vector<16x32xf32> to vector<8x8xf32>
    %74 = vector.extract_strided_slice %36 {offsets = [0, 8], sizes = [8, 8], strides = [1, 1]} : vector<16x32xf32> to vector<8x8xf32>
    %75 = vector.extract_strided_slice %36 {offsets = [0, 16], sizes = [8, 8], strides = [1, 1]} : vector<16x32xf32> to vector<8x8xf32>
    %76 = vector.extract_strided_slice %36 {offsets = [0, 24], sizes = [8, 8], strides = [1, 1]} : vector<16x32xf32> to vector<8x8xf32>
    %77 = vector.extract_strided_slice %36 {offsets = [8, 0], sizes = [8, 8], strides = [1, 1]} : vector<16x32xf32> to vector<8x8xf32>
    %78 = vector.extract_strided_slice %36 {offsets = [8, 8], sizes = [8, 8], strides = [1, 1]} : vector<16x32xf32> to vector<8x8xf32>
    %79 = vector.extract_strided_slice %36 {offsets = [8, 16], sizes = [8, 8], strides = [1, 1]} : vector<16x32xf32> to vector<8x8xf32>
    %80 = vector.extract_strided_slice %36 {offsets = [8, 24], sizes = [8, 8], strides = [1, 1]} : vector<16x32xf32> to vector<8x8xf32>
    %81 = vector.shape_cast %73 : vector<8x8xf32> to vector<1x8x8xf32>
    %82 = vector.shape_cast %74 : vector<8x8xf32> to vector<1x8x8xf32>
    %83 = vector.shape_cast %75 : vector<8x8xf32> to vector<1x8x8xf32>
    %84 = vector.shape_cast %76 : vector<8x8xf32> to vector<1x8x8xf32>
    %85 = vector.shape_cast %77 : vector<8x8xf32> to vector<1x8x8xf32>
    %86 = vector.shape_cast %78 : vector<8x8xf32> to vector<1x8x8xf32>
    %87 = vector.shape_cast %79 : vector<8x8xf32> to vector<1x8x8xf32>
    %88 = vector.shape_cast %80 : vector<8x8xf32> to vector<1x8x8xf32>
    %89 = tpu.concatenate %81, %82, %83, %84, %85, %86, %87, %88 in 0 : vector<1x8x8xf32>, vector<1x8x8xf32>, vector<1x8x8xf32>, vector<1x8x8xf32>, vector<1x8x8xf32>, vector<1x8x8xf32>, vector<1x8x8xf32>, vector<1x8x8xf32> -> vector<8x8x8xf32>
    %90 = arith.truncf %89 : vector<8x8x8xf32> to vector<8x8x8xbf16>
    %91 = tpu.iota {dimensions = array<i32: 0>} : vector<8x8xi32>
    %92 = tpu.iota {dimensions = array<i32: 1>} : vector<8x8xi32>
    %93 = arith.cmpi sle, %92, %91 : vector<8x8xi32>
    %cst_13 = arith.constant 0.000000e+00 : f32
    %cst_14 = arith.constant -1.000000e+30 : f32
    %94 = vector.broadcast %cst_13 : f32 to vector<8x8xf32>
    %95 = vector.broadcast %cst_14 : f32 to vector<8x8xf32>
    %96 = arith.select %93, %94, %95 : vector<8x8xi1>, vector<8x8xf32>
    "tpu.trace_start"() <{level = 10 : i32, message = "gnd,gmd->gnm"}> : () -> ()
    %cst_15 = arith.constant dense<0.000000e+00> : vector<8x8x8xf32>
    %97 = tpu.matmul %54, %72, %cst_15 {dimension_numbers = #tpu.dot_dimension_numbers<[2], [2], [1], [1], [0, 0, 0, 1, 1, 1], [0], [0]>} : vector<8x8x8xbf16>, vector<8x8x8xbf16>, vector<8x8x8xf32> -> vector<8x8x8xf32>
    "tpu.trace_stop"() : () -> ()
    %98 = vector.shape_cast %96 : vector<8x8xf32> to vector<1x8x8xf32>
    %99 = vector.broadcast %98 : vector<1x8x8xf32> to vector<8x8x8xf32>
    %100 = arith.addf %97, %99 : vector<8x8x8xf32>
    %cst_16 = arith.constant dense<0xFF800000> : vector<8x8xf32>
    %101 = vector.multi_reduction <maximumf>, %100, %cst_16 [2] : vector<8x8x8xf32> to vector<8x8xf32>
    %102 = vector.shape_cast %101 : vector<8x8xf32> to vector<8x8x1xf32>
    %103 = vector.broadcast %102 : vector<8x8x1xf32> to vector<8x8x8xf32>
    %104 = arith.subf %100, %103 : vector<8x8x8xf32>
    %105 = math.exp %104 : vector<8x8x8xf32>
    %cst_17 = arith.constant dense<0.000000e+00> : vector<8x8xf32>
    %106 = vector.multi_reduction <add>, %105, %cst_17 [2] : vector<8x8x8xf32> to vector<8x8xf32>
    %107 = vector.shape_cast %106 : vector<8x8xf32> to vector<8x8x1xf32>
    %108 = arith.truncf %105 : vector<8x8x8xf32> to vector<8x8x8xbf16>
    "tpu.trace_start"() <{level = 10 : i32, message = "gnm,gmd->gnd"}> : () -> ()
    %cst_18 = arith.constant dense<0.000000e+00> : vector<8x8x8xf32>
    %109 = tpu.matmul %108, %90, %cst_18 {dimension_numbers = #tpu.dot_dimension_numbers<[2], [1], [1], [2], [0, 0, 0, 1, 1, 2], [0], [0]>} : vector<8x8x8xbf16>, vector<8x8x8xbf16>, vector<8x8x8xf32> -> vector<8x8x8xf32>
    "tpu.trace_stop"() : () -> ()
    %110 = tpu.reciprocal %107 {approx = true} : vector<8x8x1xf32> -> vector<8x8x1xf32>
    %111 = vector.broadcast %110 : vector<8x8x1xf32> to vector<8x8x8xf32>
    %112 = arith.mulf %109, %111 : vector<8x8x8xf32>
    %113 = vector.extract_strided_slice %112 {offsets = [0, 0, 0], sizes = [4, 8, 8], strides = [1, 1, 1]} : vector<8x8x8xf32> to vector<4x8x8xf32>
    %114 = arith.truncf %113 : vector<4x8x8xf32> to vector<4x8x8xbf16>
    %c0_19 = arith.constant 0 : index
    %c0_20 = arith.constant 0 : index
    %c0_21 = arith.constant 0 : index
    %115 = vector.load %arg4[%c0_19, %c0_20, %c0_21] : memref<4x8x32xbf16, #tpu.memory_space<vmem>>, vector<4x8x32xbf16>
    "tpu.trace_start"() <{level = 10 : i32, message = "hnd,hdc->hnc"}> : () -> ()
    %cst_22 = arith.constant dense<0.000000e+00> : vector<4x8x32xf32>
    %116 = tpu.matmul %114, %115, %cst_22 {dimension_numbers = #tpu.dot_dimension_numbers<[2], [1], [1], [2], [0, 0, 0, 1, 1, 2], [0], [0]>} : vector<4x8x8xbf16>, vector<4x8x32xbf16>, vector<4x8x32xf32> -> vector<4x8x32xf32>
    "tpu.trace_stop"() : () -> ()
    %cst_23 = arith.constant dense<0.000000e+00> : vector<8x32xf32>
    %117 = vector.multi_reduction <add>, %116, %cst_23 [0] : vector<4x8x32xf32> to vector<8x32xf32>
    %118 = vector.extract_strided_slice %112 {offsets = [4, 0, 0], sizes = [4, 8, 8], strides = [1, 1, 1]} : vector<8x8x8xf32> to vector<4x8x8xf32>
    %119 = arith.truncf %118 : vector<4x8x8xf32> to vector<4x8x8xbf16>
    %c0_24 = arith.constant 0 : index
    %c0_25 = arith.constant 0 : index
    %c0_26 = arith.constant 0 : index
    %120 = vector.load %arg4[%c0_24, %c0_25, %c0_26] : memref<4x8x32xbf16, #tpu.memory_space<vmem>>, vector<4x8x32xbf16>
    "tpu.trace_start"() <{level = 10 : i32, message = "hnd,hdc->hnc"}> : () -> ()
    %cst_27 = arith.constant dense<0.000000e+00> : vector<4x8x32xf32>
    %121 = tpu.matmul %119, %120, %cst_27 {dimension_numbers = #tpu.dot_dimension_numbers<[2], [1], [1], [2], [0, 0, 0, 1, 1, 2], [0], [0]>} : vector<4x8x8xbf16>, vector<4x8x32xbf16>, vector<4x8x32xf32> -> vector<4x8x32xf32>
    "tpu.trace_stop"() : () -> ()
    %cst_28 = arith.constant dense<0.000000e+00> : vector<8x32xf32>
    %122 = vector.multi_reduction <add>, %121, %cst_28 [0] : vector<4x8x32xf32> to vector<8x32xf32>
    %123 = tpu.concatenate %117, %122 in 0 : vector<8x32xf32>, vector<8x32xf32> -> vector<16x32xf32>
    %c0_29 = arith.constant 0 : index
    %c0_30 = arith.constant 0 : index
    %124 = vector.load %arg5[%c0_29, %c0_30] : memref<1x32xf32, #tpu.memory_space<vmem>>, vector<1x32xf32>
    %125 = vector.shape_cast %124 : vector<1x32xf32> to vector<32xf32>
    %126 = vector.shape_cast %125 : vector<32xf32> to vector<1x32xf32>
    %127 = vector.broadcast %126 : vector<1x32xf32> to vector<16x32xf32>
    %128 = arith.addf %123, %127 : vector<16x32xf32>
    %129 = arith.addf %0, %128 : vector<16x32xf32>
    %cst_31 = arith.constant dense<0.000000e+00> : vector<16xf32>
    %130 = vector.multi_reduction <add>, %129, %cst_31 [1] : vector<16x32xf32> to vector<16xf32>
    %131 = vector.shape_cast %130 : vector<16xf32> to vector<16x1xf32>
    %cst_32 = arith.constant 3.200000e+01 : f32
    %132 = vector.broadcast %cst_32 : f32 to vector<16x1xf32>
    %133 = arith.divf %131, %132 : vector<16x1xf32>
    %134 = vector.broadcast %133 : vector<16x1xf32> to vector<16x32xf32>
    %135 = arith.subf %129, %134 : vector<16x32xf32>
    %136 = arith.mulf %135, %135 : vector<16x32xf32>
    %cst_33 = arith.constant dense<0.000000e+00> : vector<16xf32>
    %137 = vector.multi_reduction <add>, %136, %cst_33 [1] : vector<16x32xf32> to vector<16xf32>
    %138 = vector.shape_cast %137 : vector<16xf32> to vector<16x1xf32>
    %cst_34 = arith.constant 3.200000e+01 : f32
    %139 = vector.broadcast %cst_34 : f32 to vector<16x1xf32>
    %140 = arith.divf %138, %139 : vector<16x1xf32>
    %141 = vector.broadcast %133 : vector<16x1xf32> to vector<16x32xf32>
    %142 = arith.subf %129, %141 : vector<16x32xf32>
    %cst_35 = arith.constant 9.99999974E-6 : f32
    %143 = vector.broadcast %cst_35 : f32 to vector<16x1xf32>
    %144 = arith.addf %140, %143 : vector<16x1xf32>
    %145 = math.rsqrt %144 : vector<16x1xf32>
    %146 = vector.broadcast %145 : vector<16x1xf32> to vector<16x32xf32>
    %147 = arith.mulf %142, %146 : vector<16x32xf32>
    %c0_36 = arith.constant 0 : index
    %c0_37 = arith.constant 0 : index
    %148 = vector.load %arg6[%c0_36, %c0_37] : memref<1x32xf32, #tpu.memory_space<vmem>>, vector<1x32xf32>
    %149 = vector.shape_cast %148 : vector<1x32xf32> to vector<32xf32>
    %150 = vector.shape_cast %149 : vector<32xf32> to vector<1x32xf32>
    %151 = vector.broadcast %150 : vector<1x32xf32> to vector<16x32xf32>
    %152 = arith.mulf %147, %151 : vector<16x32xf32>
    %c0_38 = arith.constant 0 : index
    %c0_39 = arith.constant 0 : index
    %153 = vector.load %arg7[%c0_38, %c0_39] : memref<1x32xf32, #tpu.memory_space<vmem>>, vector<1x32xf32>
    %154 = vector.shape_cast %153 : vector<1x32xf32> to vector<32xf32>
    %155 = vector.shape_cast %154 : vector<32xf32> to vector<1x32xf32>
    %156 = vector.broadcast %155 : vector<1x32xf32> to vector<16x32xf32>
    %157 = arith.addf %152, %156 : vector<16x32xf32>
    %158 = arith.truncf %157 : vector<16x32xf32> to vector<16x32xbf16>
    %c0_40 = arith.constant 0 : index
    %c0_41 = arith.constant 0 : index
    %159 = vector.load %arg8[%c0_40, %c0_41] : memref<32x128xbf16, #tpu.memory_space<vmem>>, vector<32x128xbf16>
    %cst_42 = arith.constant dense<0.000000e+00> : vector<16x128xf32>
    %160 = tpu.matmul %158, %159, %cst_42 {dimension_numbers = #tpu.dot_dimension_numbers<[1], [0], [0], [1], [0, 0, 1, 1], [], []>} : vector<16x32xbf16>, vector<32x128xbf16>, vector<16x128xf32> -> vector<16x128xf32>
    %c0_43 = arith.constant 0 : index
    %c0_44 = arith.constant 0 : index
    %161 = vector.load %arg9[%c0_43, %c0_44] : memref<1x128xf32, #tpu.memory_space<vmem>>, vector<1x128xf32>
    %162 = vector.shape_cast %161 : vector<1x128xf32> to vector<128xf32>
    %163 = vector.shape_cast %162 : vector<128xf32> to vector<1x128xf32>
    %164 = vector.broadcast %163 : vector<1x128xf32> to vector<16x128xf32>
    %165 = arith.addf %160, %164 : vector<16x128xf32>
    %cst_45 = arith.constant 0.000000e+00 : f32
    %166 = vector.broadcast %cst_45 : f32 to vector<16x128xf32>
    %167 = arith.maximumf %165, %166 : vector<16x128xf32>
    %168 = arith.truncf %167 : vector<16x128xf32> to vector<16x128xbf16>
    %c0_46 = arith.constant 0 : index
    %c0_47 = arith.constant 0 : index
    %169 = vector.load %arg10[%c0_46, %c0_47] : memref<128x32xbf16, #tpu.memory_space<vmem>>, vector<128x32xbf16>
    %cst_48 = arith.constant dense<0.000000e+00> : vector<16x32xf32>
    %170 = tpu.matmul %168, %169, %cst_48 {dimension_numbers = #tpu.dot_dimension_numbers<[1], [0], [0], [1], [0, 0, 1, 1], [], []>} : vector<16x128xbf16>, vector<128x32xbf16>, vector<16x32xf32> -> vector<16x32xf32>
    %c0_49 = arith.constant 0 : index
    %c0_50 = arith.constant 0 : index
    %171 = vector.load %arg11[%c0_49, %c0_50] : memref<1x32xf32, #tpu.memory_space<vmem>>, vector<1x32xf32>
    %172 = vector.shape_cast %171 : vector<1x32xf32> to vector<32xf32>
    %173 = vector.shape_cast %172 : vector<32xf32> to vector<1x32xf32>
    %174 = vector.broadcast %173 : vector<1x32xf32> to vector<16x32xf32>
    %175 = arith.addf %170, %174 : vector<16x32xf32>
    %176 = arith.addf %129, %175 : vector<16x32xf32>
    %c0_51 = arith.constant 0 : index
    %c0_52 = arith.constant 0 : index
    %177 = vector.load %arg12[%c0_51, %c0_52] : memref<16x32xf32, #tpu.memory_space<vmem>>, vector<16x32xf32>
    tpu.vector_store %arg12[%c0_51, %c0_52], %176 {strides = array<i32>} : memref<16x32xf32, #tpu.memory_space<vmem>>, vector<16x32xf32>,
    return
  }
}

</mosaic_0001>

<bundles_post_ra>
// kernel: tpu_custom_call.1
= control target key start
LH: loop header
LB: loop body
LE: loop exit
PB: predicated region body
PF: predicated region fallthrough
CT: control target
= control target key end

     0   :  { %vm45_vm0 = vcmask 261120   ;;  %s2570_s0 = inlined_call_operand.vmem [shape: f32[16,32], index: 0, kind: input, shape index: {}]   ;;  %s2571_s1 = inlined_call_operand.vmem [shape: f32[1,32], index: 1, kind: input, shape index: {}]   ;;  %s2572_s2 = inlined_call_operand.vmem [shape: f32[1,32], index: 2, kind: input, shape index: {}]   ;;  %s2573_s3 = inlined_call_operand.vmem [shape: bf16[32,96], index: 3, kind: input, shape index: {}]   ;;  %s2574_s4 = inlined_call_operand.vmem [shape: bf16[4,8,32], index: 4, kind: input, shape index: {}]   ;;  %s2575_s5 = inlined_call_operand.vmem [shape: f32[1,32], index: 5, kind: input, shape index: {}]   ;;  %s2576_s6 = inlined_call_operand.vmem [shape: f32[1,32], index: 6, kind: input, shape index: {}]   ;;  %s2577_s7 = inlined_call_operand.vmem [shape: f32[1,32], index: 7, kind: input, shape index: {}]   ;;  %s2578_s8 = inlined_call_operand.vmem [shape: bf16[32,128], index: 8, kind: input, shape index: {}]   ;;  %s2579_s9 = inlined_call_operand.vmem [shape: f32[1,128], index: 9, kind: input, shape index: {}]   ;;  %s2580_s10 = inlined_call_operand.vmem [shape: bf16[128,32], index: 10, kind: input, shape index: {}]   ;;  %s2581_s11 = inlined_call_operand.vmem [shape: f32[1,32], index: 11, kind: input, shape index: {}]   ;;  %s2582_s12 = inlined_call_operand.hbm [shape: f32[16,32], index: 12, kind: output, shape index: {}]  }
   0x1   :  { %v43_v0 = vld [vmem:[%s2570_s0] sm:$0xff]  ;;  %v44_v1 = vld [vmem:[%s2570_s0 + $0x8] sm:$0xff] }
   0x2   :  { %v46_v2 = vsel %vm45_vm0, %v43_v0, 0.0  ;;  %v49_v3 = vsel %vm45_vm0, %v44_v1, 0.0 }
   0x3   :  { %47 = vadd.xlane.f32.xlu0 %v46_v2 }
   0x7   :  { %50 = vadd.xlane.f32.xlu0 %v49_v3 }
   0x8   :  { %17 = vsyncpa [#allocation3], 0  ;;  %v2045_v14 = vld [vmem:[%s2573_s3] sm:$0xff]   ;;  %v2123_v15 = vmov 0.0   ;;  %v2046_v16 = vld [vmem:[%s2573_s3 + $0x8] sm:$0xff]   ;;  %vm2124_vm1 = vmmov 0  }
   0x9   :  { %1854 = vmatprep.subr.bf16.mxu1 %v2123_v15  ;;  %1880 = vmatprep.subr.bf16.mxu0 %v2123_v15  ;;  %v1746_v25 = vld [vmem:[%s2571_s1] ss:$0 sm:$0xff]  ;;  %s2125_s14 = smov 112   ;;  %s2126_s1 = smov 120   ;;  %vm219_vm2 = vcmask 64512   ;;  %vm694_vm3 = vcmask 1043456  }
   0xa   :  { %1855 = vmatpush3.bf16.msra.mxu1 %v2045_v14  ;;  %1858 = vmatprep.mubr.msk.bf16.mxu1 %vm2124_vm1, %v2123_v15  ;;  %v1747_v29 = vld [vmem:[%s2572_s2] ss:$0 sm:$0xff]  ;;  %s2127_s2 = smov 104   ;;  %s2128_s15 = smov 96  }
   0xb   :  { %1856 = vmatprep.subr.bf16.mxu1 %v2123_v15  ;;  %1882 = vmatprep.mubr.msk.bf16.mxu0 %vm2124_vm1, %v2123_v15  ;;  %s2129_s16 = smov 64  }
   0xe   :  { %1857 = vmatpush3.bf16.msra.mxu1 %v2046_v16 }
   0xf   :  { %1862 = vmatprep.subr.bf16.mxu1 %v2123_v15 }
  0x90   :  { %v48_v4 = vpop.xlane.xlu0 %47 }
  0x91   :  { %v53_v5 = vmul.f32 0.03125, %v48_v4 }
  0x93   :  { %v55_v6 = vsub.f32 %v43_v0, %v53_v5 }
  0x94   :  { %v51_v7 = vpop.xlane.xlu0 %50 }
  0x95   :  { %v54_v8 = vmul.f32 0.03125, %v51_v7  ;;  %v57_v9 = vmul.f32 %v55_v6, %v55_v6 }
  0x97   :  { %v56_v10 = vsub.f32 %v44_v1, %v54_v8  ;;  %v59_v11 = vsel %vm45_vm0, %v57_v9, 0.0 }
  0x98   :  { %60 = vadd.xlane.f32.xlu1 %v59_v11 }
  0x99   :  { %v58_v12 = vmul.f32 %v56_v10, %v56_v10 }
  0x9b   :  { %v62_v13 = vsel %vm45_vm0, %v58_v12, 0.0 }
  0x9c   :  { %63 = vadd.xlane.f32.xlu1 %v62_v13 }
 0x125   :  { %v61_v17 = vpop.xlane.xlu1 %60 }
 0x126   :  { %v65_v18 = vmul.f32 0.03125, %v61_v17 }
 0x128   :  { %v67_v19 = vadd.f32 1e-05, %v65_v18 }
 0x129   :  { %v64_v20 = vpop.xlane.xlu1 %63 }
 0x12a   :  { %2057 = vrsqrt.f32 %v67_v19  ;;  %v66_v21 = vmul.f32 0.03125, %v64_v20 }
 0x12c   :  { %v68_v22 = vadd.f32 1e-05, %v66_v21 }
 0x12e   :  { %2059 = vrsqrt.f32 %v68_v22 }
 0x134   :  { %v2058_v23 = vpop.eup %2057 }
 0x135   :  { %v71_v24 = vmul.f32 %v2058_v23, %v55_v6 }
 0x137   :  { %v80_v28 = vmul.f32 %v1746_v25, %v71_v24 }
 0x138   :  { %v2060_v26 = vpop.eup %2059 }
 0x139   :  { %v72_v27 = vmul.f32 %v2060_v26, %v56_v10  ;;  %v89_v31 = vadd.f32 %v1747_v29, %v80_v28  ;;  %v2130_v28 = vmov -1e+30  }
 0x13b   :  { %v81_v30 = vmul.f32 %v1746_v25, %v72_v27  ;;  %v210_v25 = vlaneseq }
 0x13d   :  { %v90_v32 = vadd.f32 %v1747_v29, %v81_v30  ;;  %v211_v26 = vshrl.u32 %v210_v25, 7  ;;  %v213_v27 = vand.u32 127, %v210_v25 }
 0x13f   :  { %v91_v33 = vpack.c.bf16 %v90_v32, %v89_v31  ;;  %vm214_vm4 = vcmp.le.s32.totalorder %v213_v27, %v211_v26 }
 0x140   :  { %v2312_v29 = vsel %vm214_vm4, 0.0, %v2130_v28 }
 0x141   :  { %1859 = vmatmul.mubr.msk.bf16.vlgmr.msra.gmra.mrb[0].mxu1 %vm45_vm0, %v91_v33 }
 0x142   :  { %1864 = vmatprep.mubr.msk.bf16.mxu1 %vm2124_vm1, %v2123_v15 }
 0x214   :  { %v145_v34 = vpop.f32.mrb[0].mxu1 }
 0x215   :  { %186 = vrot.lane.b32.xlu1 %v145_v34, %s2125_s14  ;;  %183 = vrot.lane.b32.xlu0 %v145_v34, %s2126_s1  ;;  %v1860_v35 = vpop.f32.mrb[1].mxu1  ;;  %v202_v38 = vpack.c.bf16 %v145_v34, %v145_v34  ;;  %v152_v39 = vmul.f32 0.17677669, %v145_v34 }
 0x216   :  { %v148_v36 = vpop.f32.mrb[2].mxu1 }
 0x217   :  { %v1861_v37 = vpop.f32.mrb[3].mxu1  ;;  %v2249_v51 = vpack.c.bf16 %v148_v36, %v148_v36  ;;  %v174_v52 = vpack.c.bf16 %v152_v39, %v152_v39  ;;  %v153_v54 = vmul.f32 0.17677669, %v148_v36 }
 0x219   :  { %189 = vrot.lane.b32.xlu1 %v145_v34, %s2127_s2  ;;  %196 = vrot.lane.b32.xlu0 %v148_v36, %s2125_s14  ;;  %v178_v14 = vpack.c.bf16 %v153_v54, %v153_v54 }
 0x21d   :  { %217 = vrot.lane.b32.xlu0 %v202_v38, %s2128_s15  ;;  %193 = vrot.lane.b32.xlu1 %v148_v36, %s2126_s1 }
 0x221   :  { %155 = vrot.lane.b32.xlu0 %v152_v39, %s2126_s1  ;;  %199 = vrot.lane.b32.xlu1 %v148_v36, %s2127_s2 }
 0x287   :  { %v187_v40 = vpop.permute.xlu1 %186  ;;  %v184_v41 = vpop.permute.xlu0 %183 }
 0x288   :  { %v203_v42 = vpack.c.bf16 %v184_v41, %v184_v41  ;;  %v204_v45 = vpack.c.bf16 %v187_v40, %v187_v40 }
 0x28a   :  { %267 = vrot.lane.b32.xlu1 %v203_v42, %s2128_s15 }
 0x28b   :  { %v190_v43 = vpop.permute.xlu1 %189  ;;  %v197_v44 = vpop.permute.xlu0 %196 }
 0x28c   :  { %v205_v46 = vpack.c.bf16 %v190_v43, %v190_v43  ;;  %v2255_v53 = vpack.c.bf16 %v197_v44, %v197_v44 }
 0x28e   :  { %365 = vrot.lane.b32.xlu0 %v205_v46, %s2128_s15  ;;  %316 = vrot.lane.b32.xlu1 %v204_v45, %s2128_s15 }
 0x28f   :  { %v218_v47 = vpop.permute.xlu0 %217  ;;  %v194_v49 = vpop.permute.xlu1 %193 }
 0x290   :  { %v224_v48 = vsel %vm219_vm2, %v218_v47, 0  ;;  %v2247_v50 = vpack.c.bf16 %v194_v49, %v194_v49 }
 0x291   :  { %1863 = vmatpush3.bf16.xpose.msra.mxu1 %v224_v48 }
 0x292   :  { %161 = vrot.lane.b32.xlu0 %v152_v39, %s2127_s2  ;;  %158 = vrot.lane.b32.xlu1 %v152_v39, %s2125_s14 }
 0x293   :  { %1868 = vmatprep.subr.bf16.mxu1 %v2123_v15  ;;  %v200_v55 = vpop.permute.xlu1 %199  ;;  %v156_v57 = vpop.permute.xlu0 %155 }
 0x294   :  { %v2263_v56 = vpack.c.bf16 %v200_v55, %v200_v55  ;;  %v175_v63 = vpack.c.bf16 %v156_v57, %v156_v57 }
 0x296   :  { %463 = vrot.lane.b32.xlu0 %v2247_v50, %s2128_s15  ;;  %414 = vrot.lane.b32.xlu1 %v2249_v51, %s2128_s15 }
 0x298   :  { %1865 = vmatmul.mubr.msk.bf16.vlgmr.msra.gmra.mrb[4].mxu1 %vm219_vm2, %v174_v52 }
 0x299   :  { %1870 = vmatprep.mubr.msk.bf16.mxu1 %vm2124_vm1, %v2123_v15 }
 0x29a   :  { %512 = vrot.lane.b32.xlu0 %v2255_v53, %s2128_s15  ;;  %165 = vrot.lane.b32.xlu1 %v153_v54, %s2126_s1 }
 0x29e   :  { %168 = vrot.lane.b32.xlu0 %v153_v54, %s2125_s14  ;;  %561 = vrot.lane.b32.xlu1 %v2263_v56, %s2128_s15 }
 0x2a2   :  { %689 = vrot.lane.b32.xlu0 %v202_v38, %s2129_s16  ;;  %171 = vrot.lane.b32.xlu1 %v153_v54, %s2127_s2 }
 0x2a6   :  { %738 = vrot.lane.b32.xlu1 %v203_v42, %s2129_s16 }
 0x2aa   :  { %786 = vrot.lane.b32.xlu1 %v204_v45, %s2129_s16 }
 0x2ae   :  { %834 = vrot.lane.b32.xlu1 %v205_v46, %s2129_s16 }
 0x2fc   :  { %v268_v58 = vpop.permute.xlu1 %267 }
 0x2fd   :  { %v273_v59 = vsel %vm219_vm2, %v268_v58, 0 }
 0x2fe   :  { %1869 = vmatpush3.bf16.xpose.msra.mxu1 %v273_v59 }
 0x2ff   :  { %1874 = vmatprep.subr.bf16.mxu1 %v2123_v15 }
 0x300   :  { %v366_v60 = vpop.permute.xlu0 %365  ;;  %v317_v61 = vpop.permute.xlu1 %316 }
 0x301   :  { %v371_v62 = vsel %vm219_vm2, %v366_v60, 0  ;;  %v322_v2 = vsel %vm219_vm2, %v317_v61, 0 }
 0x302   :  { %1881 = vmatpush3.bf16.xpose.msra.mxu0 %v371_v62 }
 0x303   :  { %1892 = vmatprep.subr.bf16.mxu0 %v2123_v15 }
 0x304   :  { %v162_v0 = vpop.permute.xlu0 %161  ;;  %v159_v1 = vpop.permute.xlu1 %158 }
 0x305   :  { %1871 = vmatmul.mubr.msk.bf16.vlgmr.msra.gmra.mrb[8].mxu1 %vm219_vm2, %v175_v63  ;;  %v177_v3 = vpack.c.bf16 %v162_v0, %v162_v0  ;;  %v176_v7 = vpack.c.bf16 %v159_v1, %v159_v1 }
 0x306   :  { %1875 = vmatpush3.bf16.xpose.msra.mxu1 %v322_v2  ;;  %1876 = vmatprep.mubr.msk.bf16.mxu1 %vm2124_vm1, %v2123_v15 }
 0x307   :  { %1886 = vmatprep.subr.bf16.mxu1 %v2123_v15 }
 0x308   :  { %v464_v4 = vpop.permute.xlu0 %463  ;;  %v415_v5 = vpop.permute.xlu1 %414 }
 0x309   :  { %v469_v6 = vsel %vm219_vm2, %v464_v4, 0  ;;  %1883 = vmatmul.mubr.msk.bf16.vlgmr.msra.gmra.mrb[0].mxu0 %vm219_vm2, %v177_v3  ;;  %v420_v9 = vsel %vm219_vm2, %v415_v5, 0 }
 0x30a   :  { %1893 = vmatpush3.bf16.xpose.msra.mxu0 %v469_v6  ;;  %1894 = vmatprep.mubr.msk.bf16.mxu0 %vm2124_vm1, %v2123_v15 }
 0x30b   :  { %1904 = vmatprep.subr.bf16.mxu0 %v2123_v15 }
 0x30c   :  { %v166_v8 = vpop.permute.xlu1 %165  ;;  %v513_v10 = vpop.permute.xlu0 %512 }
 0x30d   :  { %1877 = vmatmul.mubr.msk.bf16.vlgmr.msra.gmra.mrb[12].mxu1 %vm219_vm2, %v176_v7  ;;  %v179_v11 = vpack.c.bf16 %v166_v8, %v166_v8  ;;  %v518_v18 = vsel %vm219_vm2, %v513_v10, 0 }
 0x30e   :  { %1887 = vmatpush3.bf16.xpose.msra.mxu1 %v420_v9  ;;  %1888 = vmatprep.mubr.msk.bf16.mxu1 %vm2124_vm1, %v2123_v15 }
 0x30f   :  { %1898 = vmatprep.subr.bf16.mxu1 %v2123_v15 }
 0x310   :  { %v562_v12 = vpop.permute.xlu1 %561  ;;  %v169_v16 = vpop.permute.xlu0 %168 }
 0x311   :  { %v567_v13 = vsel %vm219_vm2, %v562_v12, 0  ;;  %1895 = vmatmul.mubr.msk.bf16.vlgmr.msra.gmra.mrb[4].mxu0 %vm219_vm2, %v179_v11  ;;  %v180_v23 = vpack.c.bf16 %v169_v16, %v169_v16 }
 0x312   :  { %1905 = vmatpush3.bf16.xpose.msra.mxu0 %v567_v13  ;;  %1906 = vmatprep.mubr.msk.bf16.mxu0 %vm2124_vm1, %v2123_v15 }
 0x313   :  { %1916 = vmatprep.subr.bf16.mxu0 %v2123_v15 }
 0x314   :  { %v172_v17 = vpop.permute.xlu1 %171  ;;  %v690_v22 = vpop.permute.xlu0 %689 }
 0x315   :  { %1889 = vmatmul.mubr.msk.bf16.vlgmr.msra.gmra.mrb[16].mxu1 %vm219_vm2, %v178_v14  ;;  %v181_v19 = vpack.c.bf16 %v172_v17, %v172_v17  ;;  %v696_v24 = vsel %vm694_vm3, %v690_v22, 0 }
 0x316   :  { %1899 = vmatpush3.bf16.xpose.msra.mxu1 %v518_v18  ;;  %1900 = vmatprep.mubr.msk.bf16.mxu1 %vm2124_vm1, %v2123_v15 }
 0x317   :  { %1910 = vmatprep.subr.bf16.mxu1 %v2123_v15 }
 0x318   :  { %v739_v20 = vpop.permute.xlu1 %738 }
 0x319   :  { %v744_v21 = vsel %vm694_vm3, %v739_v20, 0  ;;  %1907 = vmatmul.mubr.msk.bf16.vlgmr.msra.gmra.mrb[8].mxu0 %vm219_vm2, %v181_v19 }
 0x31a   :  { %1917 = vmatpush3.bf16.msra.mxu0 %v744_v21  ;;  %1918 = vmatprep.mubr.msk.bf16.mxu0 %vm2124_vm1, %v2123_v15 }
 0x31b   :  { %1928 = vmatprep.subr.bf16.mxu0 %v2123_v15 }
 0x31c   :  { %v787_v14 = vpop.permute.xlu1 %786 }
 0x31d   :  { %1901 = vmatmul.mubr.msk.bf16.vlgmr.msra.gmra.mrb[20].mxu1 %vm219_vm2, %v180_v23 }
 0x31e   :  { %1911 = vmatpush3.bf16.msra.mxu1 %v696_v24  ;;  %1912 = vmatprep.mubr.msk.bf16.mxu1 %vm2124_vm1, %v2123_v15 }
 0x31f   :  { %1922 = vmatprep.subr.bf16.mxu1 %v2123_v15 }
 0x320   :  { %v835_v25 = vpop.permute.xlu1 %834 }
 0x36b   :  { %v260_v30 = vpop.f32.mrb[4].mxu1 }
 0x36c   :  { %v261_v31 = vadd.f32 %v260_v30, %v2312_v29  ;;  %v1866_v32 = vpop.f32.mrb[5].mxu1 }
 0x36d   :  { %v263_v33 = vpop.f32.mrb[6].mxu1 }
 0x36e   :  { %v1867_v34 = vpop.f32.mrb[7].mxu1  ;;  %v609_v35 = vsel %vm219_vm2, %v261_v31, -inf }
 0x36f   :  { %610 = vmax.xlane.f32.xlu0 %v609_v35 }
 0x3d8   :  { %v309_v36 = vpop.f32.mrb[8].mxu1 }
 0x3d9   :  { %v2317_v37 = vadd.f32 %v309_v36, %v2312_v29  ;;  %v1872_v38 = vpop.f32.mrb[9].mxu1  ;;  %v840_v36 = vsel %vm694_vm3, %v835_v25, 0 }
 0x3da   :  { %v312_v39 = vpop.f32.mrb[10].mxu1 }
 0x3db   :  { %v1873_v40 = vpop.f32.mrb[11].mxu1  ;;  %v612_v41 = vsel %vm219_vm2, %v2317_v37, -inf }
 0x3dc   :  { %v407_v42 = vpop.f32.mrb[0].mxu0  ;;  %613 = vmax.xlane.f32.xlu1 %v612_v41 }
 0x3dd   :  { %v2322_v43 = vadd.f32 %v407_v42, %v2312_v29  ;;  %v1884_v44 = vpop.f32.mrb[1].mxu0 }
 0x3de   :  { %v410_v45 = vpop.f32.mrb[2].mxu0 }
 0x3df   :  { %v1885_v46 = vpop.f32.mrb[3].mxu0  ;;  %v618_v47 = vsel %vm219_vm2, %v2322_v43, -inf }
 0x3e0   :  { %619 = vmax.xlane.f32.xlu0 %v618_v47  ;;  %v358_v48 = vpop.f32.mrb[12].mxu1 }
 0x3e1   :  { %v2327_v49 = vadd.f32 %v358_v48, %v2312_v29  ;;  %v1878_v52 = vpop.f32.mrb[13].mxu1 }
 0x3e2   :  { %v361_v54 = vpop.f32.mrb[14].mxu1 }
 0x3e3   :  { %v1879_v55 = vpop.f32.mrb[15].mxu1  ;;  %v615_v57 = vsel %vm219_vm2, %v2327_v49, -inf }
 0x3e4   :  { %v505_v58 = vpop.f32.mrb[4].mxu0  ;;  %616 = vmax.xlane.f32.xlu0 %v615_v57 }
 0x3e5   :  { %v1896_v59 = vpop.f32.mrb[5].mxu0  ;;  %v2336_v16 = vadd.f32 %v505_v58, %v2312_v29 }
 0x3e6   :  { %v508_v60 = vpop.f32.mrb[6].mxu0 }
 0x3e7   :  { %v1897_v61 = vpop.f32.mrb[7].mxu0  ;;  %v624_v18 = vsel %vm219_vm2, %v2336_v16, -inf }
 0x3e8   :  { %v456_v62 = vpop.f32.mrb[16].mxu1 }
 0x3e9   :  { %v1890_v63 = vpop.f32.mrb[17].mxu1  ;;  %v2349_v19 = vadd.f32 %v456_v62, %v2312_v29 }
 0x3ea   :  { %v459_v0 = vpop.f32.mrb[18].mxu1 }
 0x3eb   :  { %v1891_v1 = vpop.f32.mrb[19].mxu1  ;;  %v621_v22 = vsel %vm219_vm2, %v2349_v19, -inf }
 0x3ec   :  { %v603_v2 = vpop.f32.mrb[8].mxu0 }
 0x3ed   :  { %v1908_v3 = vpop.f32.mrb[9].mxu0  ;;  %930 = vrot.lane.b32.xlu1 %v2247_v50, %s2129_s16  ;;  %v792_v50 = vsel %vm694_vm3, %v787_v14, 0  ;;  %v1094_v14 = vld [vmem:[%s2574_s4] sm:$0xf] }
 0x3ee   :  { %v606_v4 = vpop.f32.mrb[10].mxu0 }
 0x3ef   :  { %v1909_v5 = vpop.f32.mrb[11].mxu0 }
 0x3f0   :  { %v554_v6 = vpop.f32.mrb[20].mxu1 }
 0x3f1   :  { %v1902_v7 = vpop.f32.mrb[21].mxu1  ;;  %v2354_v21 = vadd.f32 %v554_v6, %v2312_v29 }
 0x3f2   :  { %v557_v8 = vpop.f32.mrb[22].mxu1 }
 0x3f3   :  { %v1903_v9 = vpop.f32.mrb[23].mxu1  ;;  %v627_v23 = vsel %vm219_vm2, %v2354_v21, -inf }
 0x3fa   :  { %882 = vrot.lane.b32.xlu0 %v2249_v51, %s2129_s16  ;;  %v2343_v51 = vadd.f32 %v603_v2, %v2312_v29 }
 0x3fc   :  { %v611_v10 = vpop.xlane.xlu0 %610  ;;  %v630_v20 = vsel %vm219_vm2, %v2343_v51, -inf }
 0x3fd   :  { %v633_v11 = vsub.f32 %v261_v31, %v611_v10 }
 0x3ff   :  { %v641_v12 = vmul.f32 1.442695, %v633_v11 }
 0x401   :  { %2061 = vpow2.f32 %v641_v12 }
 0x40b   :  { %v2062_v13 = vpop.eup %2061 }
 0x40c   :  { %v681_v17 = vpack.c.bf16 %v2062_v13, %v2062_v13  ;;  %v657_v24 = vsel %vm219_vm2, %v2062_v13, 0.0 }
 0x40e   :  { %1913 = vmatmul.mubr.msk.bf16.vlgmr.msra.gmra.mrb[24].mxu1 %vm219_vm2, %v681_v17  ;;  %v1102_v17 = vsel %vm694_vm3, %v1094_v14, 0 }
 0x40f   :  { %1923 = vmatpush3.bf16.msra.mxu1 %v792_v50  ;;  %1924 = vmatprep.mubr.msk.bf16.mxu1 %vm2124_vm1, %v2123_v15  ;;  %v1095_v50 = vld [vmem:[%s2574_s4 + $0x4] sm:$0xf] }
 0x410   :  { %1934 = vmatprep.subr.bf16.mxu1 %v2123_v15 }
 0x411   :  { %625 = vmax.xlane.f32.xlu1 %v624_v18 }
 0x415   :  { %631 = vmax.xlane.f32.xlu1 %v630_v20 }
 0x419   :  { %622 = vmax.xlane.f32.xlu0 %v621_v22 }
 0x41d   :  { %628 = vmax.xlane.f32.xlu0 %v627_v23 }
 0x426   :  { %1026 = vrot.lane.b32.xlu1 %v2263_v56, %s2129_s16 }
 0x433   :  { %978 = vrot.lane.b32.xlu0 %v2255_v53, %s2129_s16 }
 0x452   :  { %658 = vadd.xlane.f32.xlu0 %v657_v24  ;;  %v1096_v24 = vld [vmem:[%s2574_s4 + $0x8] sm:$0xf] }
 0x469   :  { %v614_v26 = vpop.xlane.xlu1 %613 }
 0x46a   :  { %v634_v27 = vsub.f32 %v2317_v37, %v614_v26 }
 0x46c   :  { %v643_v28 = vmul.f32 1.442695, %v634_v27  ;;  %v1194_v27 = vsel %vm694_vm3, %v1096_v24, 0 }
 0x46d   :  { %v620_v29 = vpop.xlane.xlu0 %619  ;;  %v931_v39 = vpop.permute.xlu1 %930 }
 0x46e   :  { %2063 = vpow2.f32 %v643_v28  ;;  %v636_v30 = vsub.f32 %v2322_v43, %v620_v29  ;;  %v936_v44 = vsel %vm694_vm3, %v931_v39, 0 }
 0x470   :  { %v647_v31 = vmul.f32 1.442695, %v636_v30 }
 0x471   :  { %v617_v32 = vpop.xlane.xlu0 %616 }
 0x472   :  { %v635_v33 = vsub.f32 %v2327_v49, %v617_v32  ;;  %2065 = vpow2.f32 %v647_v31 }
 0x474   :  { %v645_v56 = vmul.f32 1.442695, %v635_v33  ;;  %v1097_v33 = vld [vmem:[%s2574_s4 + $0xc] sm:$0xf] }
 0x475   :  { %v883_v40 = vpop.permute.xlu0 %882 }
 0x476   :  { %2067 = vpow2.f32 %v645_v56  ;;  %v888_v45 = vsel %vm694_vm3, %v883_v40, 0 }
 0x478   :  { %v2064_v53 = vpop.eup %2063 }
 0x479   :  { %v660_v34 = vsel %vm219_vm2, %v2064_v53, 0.0  ;;  %v682_v35 = vpack.c.bf16 %v2064_v53, %v2064_v53 }
 0x47a   :  { %661 = vadd.xlane.f32.xlu1 %v660_v34 }
 0x47b   :  { %1919 = vmatmul.mubr.msk.bf16.vlgmr.msra.gmra.mrb[12].mxu0 %vm219_vm2, %v682_v35 }
 0x47c   :  { %1929 = vmatpush3.bf16.msra.mxu0 %v840_v36  ;;  %1930 = vmatprep.mubr.msk.bf16.mxu0 %vm2124_vm1, %v2123_v15  ;;  %v2066_v37 = vpop.eup %2065 }
 0x47d   :  { %1940 = vmatprep.subr.bf16.mxu0 %v2123_v15  ;;  %v684_v43 = vpack.c.bf16 %v2066_v37, %v2066_v37  ;;  %v666_v46 = vsel %vm219_vm2, %v2066_v37, 0.0  ;;  %v1240_v37 = vsel %vm694_vm3, %v1097_v33, 0 }
 0x480   :  { %v2068_v38 = vpop.eup %2067 }
 0x481   :  { %v663_v41 = vsel %vm219_vm2, %v2068_v38, 0.0  ;;  %v683_v42 = vpack.c.bf16 %v2068_v38, %v2068_v38 }
 0x482   :  { %664 = vadd.xlane.f32.xlu0 %v663_v41 }
 0x483   :  { %1925 = vmatmul.mubr.msk.bf16.vlgmr.msra.gmra.mrb[28].mxu1 %vm219_vm2, %v683_v42  ;;  %1931 = vmatmul.mubr.msk.bf16.vlgmr.msra.gmra.mrb[16].mxu0 %vm219_vm2, %v684_v43  ;;  %v1294_v42 = vld [vmem:[%s2574_s4 + $0x4] sm:$0xf] }
 0x484   :  { %1935 = vmatpush3.bf16.msra.mxu1 %v888_v45  ;;  %1941 = vmatpush3.bf16.msra.mxu0 %v936_v44 }
 0x485   :  { %1942 = vmatprep.mubr.msk.bf16.mxu0 %vm2124_vm1, %v2123_v15  ;;  %1952 = vmatprep.subr.bf16.mxu0 %v2123_v15 }
 0x486   :  { %667 = vadd.xlane.f32.xlu0 %v666_v46  ;;  %1936 = vmatprep.mubr.msk.bf16.mxu1 %vm2124_vm1, %v2123_v15 }
 0x487   :  { %1946 = vmatprep.subr.bf16.mxu1 %v2123_v15 }
 0x49e   :  { %v626_v47 = vpop.xlane.xlu1 %625 }
 0x49f   :  { %v638_v48 = vsub.f32 %v2336_v16, %v626_v47  ;;  %v1293_v47 = vld [vmem:[%s2574_s4] sm:$0xf] }
 0x4a1   :  { %v651_v49 = vmul.f32 1.442695, %v638_v48 }
 0x4a2   :  { %v632_v52 = vpop.xlane.xlu1 %631 }
 0x4a3   :  { %2069 = vpow2.f32 %v651_v49  ;;  %v640_v54 = vsub.f32 %v2343_v51, %v632_v52  ;;  %v1148_v51 = vsel %vm694_vm3, %v1095_v50, 0 }
 0x4a5   :  { %v655_v55 = vmul.f32 1.442695, %v640_v54 }
 0x4a6   :  { %v623_v57 = vpop.xlane.xlu0 %622  ;;  %v1027_v63 = vpop.permute.xlu1 %1026 }
 0x4a7   :  { %2071 = vpow2.f32 %v655_v55  ;;  %v637_v58 = vsub.f32 %v2349_v19, %v623_v57  ;;  %v1032_v3 = vsel %vm694_vm3, %v1027_v63, 0 }
 0x4a9   :  { %v649_v59 = vmul.f32 1.442695, %v637_v58  ;;  %v1347_v58 = vsel %vm694_vm3, %v1294_v42, 0 }
 0x4aa   :  { %v629_v60 = vpop.xlane.xlu0 %628 }
 0x4ab   :  { %2073 = vpow2.f32 %v649_v59  ;;  %v639_v61 = vsub.f32 %v2354_v21, %v629_v60  ;;  %v1301_v59 = vsel %vm694_vm3, %v1293_v47, 0 }
 0x4ad   :  { %v2070_v62 = vpop.eup %2069  ;;  %v653_v0 = vmul.f32 1.442695, %v639_v61 }
 0x4ae   :  { %v672_v1 = vsel %vm219_vm2, %v2070_v62, 0.0  ;;  %v686_v2 = vpack.c.bf16 %v2070_v62, %v2070_v62  ;;  %v979_v7 = vpop.permute.xlu0 %978 }
 0x4af   :  { %2075 = vpow2.f32 %v653_v0  ;;  %673 = vadd.xlane.f32.xlu1 %v672_v1  ;;  %v984_v11 = vsel %vm694_vm3, %v979_v7, 0  ;;  %v1296_v1 = vld [vmem:[%s2574_s4 + $0xc] sm:$0xf] }
 0x4b0   :  { %1943 = vmatmul.mubr.msk.bf16.vlgmr.msra.gmra.mrb[20].mxu0 %vm219_vm2, %v686_v2 }
 0x4b1   :  { %v2072_v4 = vpop.eup %2071  ;;  %1953 = vmatpush3.bf16.msra.mxu0 %v1032_v3  ;;  %1954 = vmatprep.mubr.msk.bf16.mxu0 %vm2124_vm1, %v2123_v15 }
 0x4b2   :  { %v678_v5 = vsel %vm219_vm2, %v2072_v4, 0.0  ;;  %1964 = vmatprep.subr.bf16.mxu0 %v2123_v15  ;;  %v688_v10 = vpack.c.bf16 %v2072_v4, %v2072_v4 }
 0x4b3   :  { %679 = vadd.xlane.f32.xlu1 %v678_v5 }
 0x4b5   :  { %v2074_v6 = vpop.eup %2073 }
 0x4b6   :  { %v669_v8 = vsel %vm219_vm2, %v2074_v6, 0.0  ;;  %v685_v9 = vpack.c.bf16 %v2074_v6, %v2074_v6 }
 0x4b7   :  { %670 = vadd.xlane.f32.xlu0 %v669_v8  ;;  %v1439_v8 = vsel %vm694_vm3, %v1296_v1, 0 }
 0x4b8   :  { %1937 = vmatmul.mubr.msk.bf16.vlgmr.msra.gmra.mrb[32].mxu1 %vm219_vm2, %v685_v9  ;;  %1955 = vmatmul.mubr.msk.bf16.vlgmr.msra.gmra.mrb[24].mxu0 %vm219_vm2, %v688_v10 }
 0x4b9   :  { %v2076_v12 = vpop.eup %2075  ;;  %1947 = vmatpush3.bf16.msra.mxu1 %v984_v11  ;;  %1948 = vmatprep.mubr.msk.bf16.mxu1 %vm2124_vm1, %v2123_v15 }
 0x4ba   :  { %v675_v13 = vsel %vm219_vm2, %v2076_v12, 0.0  ;;  %1958 = vmatprep.subr.bf16.mxu1 %v2123_v15  ;;  %1966 = vmatprep.mubr.msk.bf16.mxu0 %vm2124_vm1, %v2123_v15  ;;  %v687_v16 = vpack.c.bf16 %v2076_v12, %v2076_v12 }
 0x4bb   :  { %676 = vadd.xlane.f32.xlu0 %v675_v13  ;;  %1965 = vmatpush3.bf16.msra.mxu0 %v1148_v51  ;;  %v1295_v13 = vld [vmem:[%s2574_s4 + $0x8] sm:$0xf] }
 0x4bc   :  { %1976 = vmatprep.subr.bf16.mxu0 %v2123_v15 }
 0x4c0   :  { %1949 = vmatmul.mubr.msk.bf16.vlgmr.msra.gmra.mrb[36].mxu1 %vm219_vm2, %v687_v16 }
 0x4c1   :  { %1959 = vmatpush3.bf16.msra.mxu1 %v1102_v17  ;;  %1960 = vmatprep.mubr.msk.bf16.mxu1 %vm2124_vm1, %v2123_v15 }
 0x4c2   :  { %1970 = vmatprep.subr.bf16.mxu1 %v2123_v15 }
 0x4df   :  { %v659_v18 = vpop.xlane.xlu0 %658 }
 0x4e0   :  { %2077 = vrcp.f32 %v659_v18 }
 0x4e1   :  { %v732_v19 = vpop.f32.mrb[24].mxu1 }
 0x4e2   :  { %v1914_v20 = vpop.f32.mrb[25].mxu1 }
 0x4e3   :  { %v735_v21 = vpop.f32.mrb[26].mxu1 }
 0x4e4   :  { %v1915_v22 = vpop.f32.mrb[27].mxu1 }
 0x4ea   :  { %v2078_v23 = vpop.eup %2077 }
 0x4eb   :  { %v1082_v25 = vmul.f32 %v2078_v23, %v732_v19  ;;  %v1393_v23 = vsel %vm694_vm3, %v1295_v13, 0 }
 0x4ed   :  { %v1090_v26 = vpack.c.bf16 %v1082_v25, %v1082_v25 }
 0x4ef   :  { %1961 = vmatmul.mubr.msk.bf16.vlgmr.msra.gmra.mrb[40].mxu1 %vm219_vm2, %v1090_v26 }
 0x4f0   :  { %1971 = vmatpush3.bf16.msra.mxu1 %v1194_v27  ;;  %1972 = vmatprep.mubr.msk.bf16.mxu1 %vm2124_vm1, %v2123_v15 }
 0x4f1   :  { %1982 = vmatprep.subr.bf16.mxu1 %v2123_v15 }
 0x507   :  { %v662_v28 = vpop.xlane.xlu1 %661 }
 0x508   :  { %2079 = vrcp.f32 %v662_v28 }
 0x50f   :  { %v665_v29 = vpop.xlane.xlu0 %664 }
 0x510   :  { %2081 = vrcp.f32 %v665_v29 }
 0x512   :  { %v2080_v31 = vpop.eup %2079 }
 0x513   :  { %v668_v30 = vpop.xlane.xlu0 %667 }
 0x514   :  { %2083 = vrcp.f32 %v668_v30 }
 0x51a   :  { %v2082_v38 = vpop.eup %2081 }
 0x51e   :  { %v2084_v39 = vpop.eup %2083 }
 0x53c   :  { %v674_v60 = vpop.xlane.xlu1 %673 }
 0x53d   :  { %2085 = vrcp.f32 %v674_v60 }
 0x540   :  { %v680_v61 = vpop.xlane.xlu1 %679 }
 0x541   :  { %2087 = vrcp.f32 %v680_v61 }
 0x544   :  { %v671_v62 = vpop.xlane.xlu0 %670 }
 0x545   :  { %2089 = vrcp.f32 %v671_v62 }
 0x547   :  { %v2086_v63 = vpop.eup %2085 }
 0x548   :  { %v677_v5 = vpop.xlane.xlu0 %676 }
 0x549   :  { %2091 = vrcp.f32 %v677_v5 }
 0x54b   :  { %v2088_v9 = vpop.eup %2087 }
 0x54e   :  { %v780_v32 = vpop.f32.mrb[12].mxu0 }
 0x54f   :  { %v1083_v56 = vmul.f32 %v2080_v31, %v780_v32  ;;  %v1920_v53 = vpop.f32.mrb[13].mxu0  ;;  %v2090_v10 = vpop.eup %2089 }
 0x550   :  { %v783_v34 = vpop.f32.mrb[14].mxu0 }
 0x551   :  { %v1091_v35 = vpack.c.bf16 %v1083_v56, %v1083_v56  ;;  %v1921_v36 = vpop.f32.mrb[15].mxu0 }
 0x553   :  { %1967 = vmatmul.mubr.msk.bf16.vlgmr.msra.gmra.mrb[28].mxu0 %vm219_vm2, %v1091_v35  ;;  %v2092_v24 = vpop.eup %2091 }
 0x554   :  { %1977 = vmatpush3.bf16.msra.mxu0 %v1240_v37  ;;  %1978 = vmatprep.mubr.msk.bf16.mxu0 %vm2124_vm1, %v2123_v15 }
 0x555   :  { %1988 = vmatprep.subr.bf16.mxu0 %v2123_v15 }
 0x556   :  { %v828_v40 = vpop.f32.mrb[28].mxu1  ;;  %v876_v41 = vpop.f32.mrb[16].mxu0 }
 0x557   :  { %v1084_v43 = vmul.f32 %v2082_v38, %v828_v40  ;;  %v1085_v44 = vmul.f32 %v2084_v39, %v876_v41  ;;  %v1926_v45 = vpop.f32.mrb[29].mxu1  ;;  %v1932_v46 = vpop.f32.mrb[17].mxu0 }
 0x558   :  { %v831_v48 = vpop.f32.mrb[30].mxu1  ;;  %v879_v49 = vpop.f32.mrb[18].mxu0 }
 0x559   :  { %v1092_v52 = vpack.c.bf16 %v1084_v43, %v1084_v43  ;;  %v1093_v54 = vpack.c.bf16 %v1085_v44, %v1085_v44  ;;  %v1927_v55 = vpop.f32.mrb[31].mxu1  ;;  %v1933_v57 = vpop.f32.mrb[19].mxu0  ;;  %v1775_v49 = vld [vmem:[%s2575_s5] ss:$0 sm:$0xff] }
 0x55b   :  { %1973 = vmatmul.mubr.msk.bf16.vlgmr.msra.gmra.mrb[44].mxu1 %vm219_vm2, %v1092_v52  ;;  %1979 = vmatmul.mubr.msk.bf16.vlgmr.msra.gmra.mrb[32].mxu0 %vm219_vm2, %v1093_v54 }
 0x55c   :  { %1989 = vmatpush3.bf16.msra.mxu0 %v1347_v58  ;;  %1990 = vmatprep.mubr.msk.bf16.mxu0 %vm2124_vm1, %v2123_v15  ;;  %v2097_v58 = vld [vmem:[%s2570_s0] sm:$0xff] }
 0x55d   :  { %1983 = vmatpush3.bf16.msra.mxu1 %v1301_v59  ;;  %2000 = vmatprep.subr.bf16.mxu0 %v2123_v15 }
 0x55e   :  { %1984 = vmatprep.mubr.msk.bf16.mxu1 %vm2124_vm1, %v2123_v15  ;;  %1994 = vmatprep.subr.bf16.mxu1 %v2123_v15 }
 0x583   :  { %v972_v0 = vpop.f32.mrb[20].mxu0 }
 0x584   :  { %v1087_v2 = vmul.f32 %v2086_v63, %v972_v0  ;;  %v1944_v3 = vpop.f32.mrb[21].mxu0 }
 0x585   :  { %v975_v4 = vpop.f32.mrb[22].mxu0 }
 0x586   :  { %v1290_v6 = vpack.c.bf16 %v1087_v2, %v1087_v2  ;;  %v1945_v7 = vpop.f32.mrb[23].mxu0 }
 0x588   :  { %1991 = vmatmul.mubr.msk.bf16.vlgmr.msra.gmra.mrb[36].mxu0 %vm219_vm2, %v1290_v6 }
 0x589   :  { %2001 = vmatpush3.bf16.msra.mxu0 %v1439_v8  ;;  %2002 = vmatprep.mubr.msk.bf16.mxu0 %vm2124_vm1, %v2123_v15 }
 0x58a   :  { %2014 = vmatprep.subr.bf16.mxu0 %v2123_v15 }
 0x58b   :  { %v924_v11 = vpop.f32.mrb[32].mxu1  ;;  %v1068_v12 = vpop.f32.mrb[24].mxu0 }
 0x58c   :  { %v1086_v14 = vmul.f32 %v2090_v10, %v924_v11  ;;  %v1089_v16 = vmul.f32 %v2088_v9, %v1068_v12  ;;  %v1938_v17 = vpop.f32.mrb[33].mxu1  ;;  %v1956_v50 = vpop.f32.mrb[25].mxu0 }
 0x58d   :  { %v927_v51 = vpop.f32.mrb[34].mxu1  ;;  %v1071_v18 = vpop.f32.mrb[26].mxu0 }
 0x58e   :  { %v1289_v19 = vpack.c.bf16 %v1086_v14, %v1086_v14  ;;  %v1292_v20 = vpack.c.bf16 %v1089_v16, %v1089_v16  ;;  %v1939_v21 = vpop.f32.mrb[35].mxu1  ;;  %v1957_v22 = vpop.f32.mrb[27].mxu0 }
 0x590   :  { %1985 = vmatmul.mubr.msk.bf16.vlgmr.msra.gmra.mrb[48].mxu1 %vm219_vm2, %v1289_v19  ;;  %2003 = vmatmul.mubr.msk.bf16.vlgmr.msra.gmra.mrb[40].mxu0 %vm219_vm2, %v1292_v20  ;;  %v2098_v20 = vld [vmem:[%s2570_s0 + $0x8] sm:$0xff] }
 0x591   :  { %1995 = vmatpush3.bf16.msra.mxu1 %v1393_v23  ;;  %1996 = vmatprep.mubr.msk.bf16.mxu1 %vm2124_vm1, %v2123_v15 }
 0x592   :  { %2006 = vmatprep.subr.bf16.mxu1 %v2123_v15  ;;  %2030 = vmatprep.mubr.msk.bf16.mxu0 %vm2124_vm1, %v2123_v15 }
 0x593   :  { %v1020_v25 = vpop.f32.mrb[36].mxu1 }
 0x594   :  { %v1088_v26 = vmul.f32 %v2092_v24, %v1020_v25  ;;  %v1950_v27 = vpop.f32.mrb[37].mxu1 }
 0x595   :  { %v1023_v28 = vpop.f32.mrb[38].mxu1 }
 0x596   :  { %v1291_v29 = vpack.c.bf16 %v1088_v26, %v1088_v26  ;;  %v1951_v30 = vpop.f32.mrb[39].mxu1 }
 0x598   :  { %1997 = vmatmul.mubr.msk.bf16.vlgmr.msra.gmra.mrb[52].mxu1 %vm219_vm2, %v1291_v29 }
 0x599   :  { %2010 = vmatprep.mubr.msk.bf16.mxu1 %vm2124_vm1, %v2123_v15 }
 0x5c2   :  { %v1138_v31 = vpop.f32.mrb[40].mxu1 }
 0x5c3   :  { %v1962_v32 = vpop.f32.mrb[41].mxu1  ;;  %v1282_v34 = vsel %vm45_vm0, %v1138_v31, 0.0 }
 0x5c4   :  { %v1141_v33 = vpop.f32.mrb[42].mxu1 }
 0x5c5   :  { %v1963_v56 = vpop.f32.mrb[43].mxu1  ;;  %v2047_v33 = vld [vmem:[%s2578_s8] sm:$0xff]  }
 0x5c6   :  { %2007 = vmatpush3.bf16.msra.mxu1 %v2047_v33  ;;  %v2048_v56 = vld [vmem:[%s2578_s8 + $0x8] sm:$0xff]  }
 0x5c7   :  { %2008 = vmatprep.subr.bf16.mxu1 %v2123_v15 }
 0x5ca   :  { %2009 = vmatpush3.bf16.msra.mxu1 %v2048_v56 }
 0x626   :  { %v1184_v53 = vpop.f32.mrb[28].mxu0 }
 0x627   :  { %v1283_v35 = vsel %vm45_vm0, %v1184_v53, 0.0  ;;  %v1968_v36 = vpop.f32.mrb[29].mxu0  ;;  %v2049_v53 = vld [vmem:[%s2580_s10] sm:$0xff]  }
 0x628   :  { %v1284_v37 = vadd.f32 %v1283_v35, %v1282_v34  ;;  %v1187_v38 = vpop.f32.mrb[30].mxu0  ;;  %2015 = vmatpush3.bf16.msra.mxu0 %v2049_v53  ;;  %v2050_v34 = vld [vmem:[%s2580_s10 + $0x8] sm:$0xff]   ;;  %v2051_v35 = vld [vmem:[%s2580_s10 + $0x10] sm:$0xff]   ;;  %v2052_v36 = vld [vmem:[%s2580_s10 + $0x18] sm:$0xff]  }
 0x629   :  { %v1969_v39 = vpop.f32.mrb[31].mxu0  ;;  %2016 = vmatprep.subr.bf16.mxu0 %v2123_v15  ;;  %v2054_v38 = vld [vmem:[%s2580_s10 + $0x28] sm:$0xff]  }
 0x62c   :  { %2017 = vmatpush3.bf16.msra.mxu0 %v2050_v34 }
 0x62d   :  { %2018 = vmatprep.subr.bf16.mxu0 %v2123_v15 }
 0x62e   :  { %v1230_v40 = vpop.f32.mrb[44].mxu1  ;;  %v1276_v41 = vpop.f32.mrb[32].mxu0 }
 0x62f   :  { %v1285_v42 = vsel %vm45_vm0, %v1230_v40, 0.0  ;;  %v1974_v43 = vpop.f32.mrb[45].mxu1  ;;  %v1980_v44 = vpop.f32.mrb[33].mxu0  ;;  %v1287_v48 = vsel %vm45_vm0, %v1276_v41, 0.0 }
 0x630   :  { %v1286_v45 = vadd.f32 %v1285_v42, %v1284_v37  ;;  %v1233_v46 = vpop.f32.mrb[46].mxu1  ;;  %v1279_v47 = vpop.f32.mrb[34].mxu0  ;;  %2019 = vmatpush3.bf16.msra.mxu0 %v2051_v35  ;;  %v2053_v37 = vld [vmem:[%s2580_s10 + $0x20] sm:$0xff]  }
 0x631   :  { %v1975_v52 = vpop.f32.mrb[47].mxu1  ;;  %v1981_v54 = vpop.f32.mrb[35].mxu0  ;;  %2020 = vmatprep.subr.bf16.mxu0 %v2123_v15  ;;  %v1776_v47 = vld [vmem:[%s2576_s6] ss:$0 sm:$0xff] }
 0x632   :  { %v1288_v55 = vadd.f32 %v1287_v48, %v1286_v45  ;;  %v1777_v54 = vld [vmem:[%s2577_s7] ss:$0 sm:$0xff] }
 0x634   :  { %v1495_v57 = vadd.f32 %v1775_v49, %v1288_v55  ;;  %2021 = vmatpush3.bf16.msra.mxu0 %v2052_v36 }
 0x635   :  { %2022 = vmatprep.subr.bf16.mxu0 %v2123_v15 }
 0x636   :  { %v2484_v59 = vadd.f32 %v2097_v58, %v1495_v57 }
 0x638   :  { %v1499_v60 = vsel %vm45_vm0, %v2484_v59, 0.0  ;;  %2023 = vmatpush3.bf16.msra.mxu0 %v2053_v37 }
 0x639   :  { %1500 = vadd.xlane.f32.xlu0 %v1499_v60  ;;  %2024 = vmatprep.subr.bf16.mxu0 %v2123_v15 }
 0x63c   :  { %2025 = vmatpush3.bf16.msra.mxu0 %v2054_v38 }
 0x63d   :  { %2026 = vmatprep.subr.bf16.mxu0 %v2123_v15 }
 0x65b   :  { %v1383_v61 = vpop.f32.mrb[36].mxu0 }
 0x65c   :  { %v1992_v62 = vpop.f32.mrb[37].mxu0  ;;  %v1482_v3 = vsel %vm45_vm0, %v1383_v61, 0.0  ;;  %v2055_v61 = vld [vmem:[%s2580_s10 + $0x30] sm:$0xff]  }
 0x65d   :  { %v1386_v63 = vpop.f32.mrb[38].mxu0  ;;  %2027 = vmatpush3.bf16.msra.mxu0 %v2055_v61  ;;  %v2056_v62 = vld [vmem:[%s2580_s10 + $0x38] sm:$0xff]   ;;  %s2131_s10 = smov [#allocation2]  }
 0x65e   :  { %v1993_v0 = vpop.f32.mrb[39].mxu0  ;;  %2028 = vmatprep.subr.bf16.mxu0 %v2123_v15  ;;  %v1778_v63 = vld [vmem:[%s2579_s9] ss:$0 sm:$0xff]  ;;  %s1735_s9 = sshll.u32 %s2131_s10, 4  ;;  %s1736_s9 = int_to_ptr.vmem [resolvable:$true] %s1735_s9 }
 0x65f   :  { %v1782_v15 = vld [vmem:[%s2581_s11] ss:$0 sm:$0xff]  ;;  %s2099_s16 = scalar_lea.vmem %s1736_s9, 256  ;;  %p2104_p1 = scmp.lt.s32.totalorder %s1736_s9, %s1736_s9 }
 0x660   :  { %p2100_p0 = scmp.ne.s32.totalorder %s1736_s9, %s2099_s16  ;;  %p2105_p2 = scmp.lt.s32.totalorder %s2099_s16, %s2099_s16 }
 0x661   :  { %2029 = vmatpush3.bf16.msra.mxu0 %v2056_v62 }
 0x662   :  { %p2106_p3 = por %p2105_p2, %p2104_p1 }
 0x663   :  { %v1337_v1 = vpop.f32.mrb[48].mxu1  ;;  %v1475_v2 = vpop.f32.mrb[40].mxu0 }
 0x664   :  { %v1481_v4 = vsel %vm45_vm0, %v1337_v1, 0.0  ;;  %v1986_v5 = vpop.f32.mrb[49].mxu1  ;;  %v2004_v6 = vpop.f32.mrb[41].mxu0  ;;  %v1486_v50 = vsel %vm45_vm0, %v1475_v2, 0.0  ;;  %p2107_p4 = pnand %p2106_p3, %p2100_p0 }
 0x665   :  { %v1483_v7 = vadd.f32 %v1482_v3, %v1481_v4  ;;  %v1340_v8 = vpop.f32.mrb[50].mxu1  ;;  %v1478_v9 = vpop.f32.mrb[42].mxu0 }
 0x666   :  { %v1987_v10 = vpop.f32.mrb[51].mxu1  ;;  %v2005_v11 = vpop.f32.mrb[43].mxu0 }
 0x66b   :  { %v1429_v12 = vpop.f32.mrb[52].mxu1 }
 0x66c   :  { %v1484_v13 = vsel %vm45_vm0, %v1429_v12, 0.0  ;;  %v1998_v14 = vpop.f32.mrb[53].mxu1 }
 0x66d   :  { %v1485_v16 = vadd.f32 %v1484_v13, %v1483_v7  ;;  %v1432_v17 = vpop.f32.mrb[54].mxu1 }
 0x66e   :  { %v1999_v51 = vpop.f32.mrb[55].mxu1 }
 0x66f   :  { %v1487_v18 = vadd.f32 %v1486_v50, %v1485_v16 }
 0x671   :  { %v1496_v19 = vadd.f32 %v1775_v49, %v1487_v18 }
 0x673   :  { %v2495_v21 = vadd.f32 %v2098_v20, %v1496_v19 }
 0x675   :  { %v1502_v22 = vsel %vm45_vm0, %v2495_v21, 0.0 }
 0x676   :  { %1503 = vadd.xlane.f32.xlu1 %v1502_v22 }
 0x6c6   :  { %v1501_v23 = vpop.xlane.xlu0 %1500 }
 0x6c7   :  { %v1505_v24 = vmul.f32 0.03125, %v1501_v23 }
 0x6c9   :  { %v1507_v25 = vsub.f32 %v2484_v59, %v1505_v24 }
 0x6cb   :  { %v1509_v26 = vmul.f32 %v1507_v25, %v1507_v25 }
 0x6cd   :  { %v1511_v27 = vsel %vm45_vm0, %v1509_v26, 0.0 }
 0x6ce   :  { %1512 = vadd.xlane.f32.xlu0 %v1511_v27 }
 0x703   :  { %v1504_v28 = vpop.xlane.xlu1 %1503 }
 0x704   :  { %v1506_v29 = vmul.f32 0.03125, %v1504_v28 }
 0x706   :  { %v1508_v30 = vsub.f32 %v2495_v21, %v1506_v29 }
 0x708   :  { %v1510_v31 = vmul.f32 %v1508_v30, %v1508_v30 }
 0x70a   :  { %v1514_v32 = vsel %vm45_vm0, %v1510_v31, 0.0 }
 0x70b   :  { %1515 = vadd.xlane.f32.xlu1 %v1514_v32 }
 0x75b   :  { %v1513_v39 = vpop.xlane.xlu0 %1512 }
 0x75c   :  { %v1517_v40 = vmul.f32 0.03125, %v1513_v39 }
 0x75e   :  { %v1519_v41 = vadd.f32 1e-05, %v1517_v40 }
 0x760   :  { %2093 = vrsqrt.f32 %v1519_v41 }
 0x76a   :  { %v2094_v45 = vpop.eup %2093 }
 0x76b   :  { %v1523_v46 = vmul.f32 %v2094_v45, %v1507_v25 }
 0x76d   :  { %v1532_v49 = vmul.f32 %v1776_v47, %v1523_v46 }
 0x76f   :  { %v1541_v57 = vadd.f32 %v1777_v54, %v1532_v49 }
 0x798   :  { %v1516_v42 = vpop.xlane.xlu1 %1515 }
 0x799   :  { %v1518_v43 = vmul.f32 0.03125, %v1516_v42 }
 0x79b   :  { %v1520_v44 = vadd.f32 1e-05, %v1518_v43 }
 0x79d   :  { %2095 = vrsqrt.f32 %v1520_v44 }
 0x7a7   :  { %v2096_v48 = vpop.eup %2095 }
 0x7a8   :  { %v1524_v52 = vmul.f32 %v2096_v48, %v1508_v30 }
 0x7aa   :  { %v1533_v55 = vmul.f32 %v1776_v47, %v1524_v52 }
 0x7ac   :  { %v1542_v58 = vadd.f32 %v1777_v54, %v1533_v55 }
 0x7ae   :  { %v1543_v60 = vpack.c.bf16 %v1542_v58, %v1541_v57 }
 0x7b0   :  { %2011 = vmatmul.mubr.msk.bf16.vlgmr.msra.gmra.mrb[56].mxu1 %vm45_vm0, %v1543_v60 }
 0x883   :  { %v1604_v0 = vpop.f32.mrb[56].mxu1 }
 0x884   :  { %v1605_v1 = vadd.f32 %v1778_v63, %v1604_v0  ;;  %v2012_v2 = vpop.f32.mrb[57].mxu1 }
 0x885   :  { %v1607_v3 = vpop.f32.mrb[58].mxu1 }
 0x886   :  { %v1608_v4 = vadd.f32 %v1778_v63, %v1607_v3  ;;  %v2013_v5 = vpop.f32.mrb[59].mxu1  ;;  %v1611_v6 = vmax.f32 %v1605_v1, 0.0 }
 0x888   :  { %v1612_v7 = vmax.f32 %v1608_v4, 0.0 }
 0x88a   :  { %v1613_v8 = vpack.c.bf16 %v1612_v7, %v1611_v6 }
 0x88c   :  { %2031 = vmatmul.mubr.bf16.vlgmr.msra.gmra.mrb[44].mxu0 %v1613_v8 }
 0x95f   :  { %v1719_v9 = vpop.f32.mrb[44].mxu0 }
 0x960   :  { %v1720_v10 = vadd.f32 %v1782_v15, %v1719_v9  ;;  %v2032_v11 = vpop.f32.mrb[45].mxu0 }
 0x961   :  { %v1722_v12 = vpop.f32.mrb[46].mxu0 }
 0x962   :  { %v1726_v13 = vadd.f32 %v1720_v10, %v2484_v59  ;;  %v1723_v14 = vadd.f32 %v1782_v15, %v1722_v12  ;;  %v2033_v16 = vpop.f32.mrb[47].mxu0 }
 0x964   :  { %1728 = vst.msk [vmem:[#allocation2] sm:$0xff] %vm45_vm0, %v1726_v13  ;;  %v1727_v17 = vadd.f32 %v1723_v14, %v2495_v21 }
 0x966   :  { %1729 = vst.msk [vmem:[#allocation2 + $0x8] sm:$0xff] %vm45_vm0, %v1727_v17 }
 0x967   :  { %2110 = shalt.err (!%p2107_p4)
}
 0x968   :  { %s2111_s18 = scalar_lea.hbm %s2582_s12, 256 }
 0x969   :  { %p2112_p5 = scmp.ne.s32.totalorder %s2582_s12, %s2111_s18  ;;  %p2115_p6 = scmp.lt.u32.totalorder %s2111_s18, %s2582_s12 }
 0x96b   :  { %p2117_p7 = pnand %p2115_p6, %p2112_p5 }
 0x96d   :  { %2120 = shalt.err (!%p2117_p7)
}
 0x96e   :  { %s2132_s23 = smov 128   ;;  %s2133_s24 = smov 8  }
 0x96f   :  { %1741 = dma.vmem_to_hbm [thread:$0]  %s1736_s9, 256, %s2582_s12, [#allocation3], %s2132_s23, %s2132_s23, %s2133_s24  }
 0x970   :  { %2121 = dma.done.wait [#allocation3], 256  }
 0x971   :  { %2122 = vsyncadd [#allocation3], 4294967040 }
 0x972   :  { %1745 = vsyncpa [#allocation3], 1 }

</bundles_post_ra>
